<compile_context>
chip_gen: v7x
topology: tpu7x:2x2x1
jax: 0.10.0
libtpu: 0.0.40
codegen_flags: <defaults>
</compile_context>

<pallas_src>
import functools

import jax
import jax.numpy as jnp
from jax import lax
from jax.experimental import pallas as pl
from jax.experimental.pallas import tpu as pltpu


def _round_up(x, m):
    return (x + m - 1) // m * m


def _lstm_gen_kernel(x_ref, wih_ref, whh_ref, b_ref, wout_ref, bout_ref,
                     out_ref, xproj_sc, hall_sc,
                     *, seq_len, batch_pad):
    H = whh_ref.shape[0]

    # ---- Prologue: hoisted input projection (+ fused bias) -----------------
    # One (S*Bp, D) @ (D, 4H) MXU pass instead of S tiny per-step matmuls.
    xproj_sc[...] = (
        jnp.dot(x_ref[...], wih_ref[...], preferred_element_type=jnp.float32)
        + b_ref[...])

    whh = whh_ref[...]          # resident recurrent weight (hoisted load)

    h0 = jnp.zeros((batch_pad, H), jnp.float32)
    c0 = jnp.zeros((batch_pad, H), jnp.float32)

    # ---- Serial recurrence over time (short fixed trip count -> unrolled) --
    # h/c ride in the loop carry (vregs); only h_new is stored, into the
    # batched hidden-state slab consumed by the output head.
    def step(t, carry):
        h, c = carry
        row = pl.multiple_of(t * batch_pad, batch_pad)   # tile-aligned slab start
        gates = (xproj_sc[pl.ds(row, batch_pad), :]
                 + jnp.dot(h, whh, preferred_element_type=jnp.float32))
        i_g = jax.nn.sigmoid(gates[:, 0 * H:1 * H])
        f_g = jax.nn.sigmoid(gates[:, 1 * H:2 * H])
        g_g = jnp.tanh(gates[:, 2 * H:3 * H])
        o_g = jax.nn.sigmoid(gates[:, 3 * H:4 * H])
        c_new = f_g * c + i_g * g_g
        h_new = o_g * jnp.tanh(c_new)
        hall_sc[pl.ds(row, batch_pad), :] = h_new
        return (h_new, c_new)

    lax.fori_loop(0, seq_len, step, (h0, c0), unroll=True)

    # ---- Batched output head: Linear + Tanh, one lane-dense writeback ------
    out_ref[...] = jnp.tanh(
        jnp.dot(hall_sc[...], wout_ref[...], preferred_element_type=jnp.float32)
        + bout_ref[...]).astype(out_ref.dtype)


@jax.jit
def lstm_generator_forward(x, w_ih_t, w_hh_t, bias, w_out_t, b_out):
    """x: (batch, seq, in_dim) batch_first. Returns (batch, seq, out_dim)."""
    B, S, D = x.shape
    H = w_hh_t.shape[0]
    O = w_out_t.shape[1]

    Bp = _round_up(B, 8)                    # sublane-aligned batch
    Op = _round_up(max(O, 128), 128)        # lane-dense output width

    # (B,S,D) -> (S,B,D) -> pad batch -> flatten (time, batch) rows.
    x_sbd = jnp.transpose(x, (1, 0, 2)).astype(jnp.float32)
    x_pad = jnp.zeros((S, Bp, D), jnp.float32).at[:, :B, :].set(x_sbd)
    x_flat = x_pad.reshape(S * Bp, D)

    bias2 = bias.reshape(1, 4 * H).astype(jnp.float32)
    wout_pad = jnp.zeros((H, Op), jnp.float32).at[:, :O].set(w_out_t)
    bout_pad = jnp.zeros((1, Op), jnp.float32).at[:, :O].set(b_out.reshape(1, O))

    out_flat = pl.pallas_call(
        functools.partial(_lstm_gen_kernel, seq_len=S, batch_pad=Bp),
        out_shape=jax.ShapeDtypeStruct((S * Bp, Op), jnp.float32),
        grid_spec=pltpu.PrefetchScalarGridSpec(
            num_scalar_prefetch=0,
            grid=(1,),                                   # whole recurrence in one step
            in_specs=[
                pl.BlockSpec((S * Bp, D), lambda i: (0, 0)),     # x (flat, seq-major)
                pl.BlockSpec((D, 4 * H), lambda i: (0, 0)),      # W_ih^T (resident)
                pl.BlockSpec((H, 4 * H), lambda i: (0, 0)),      # W_hh^T (resident)
                pl.BlockSpec((1, 4 * H), lambda i: (0, 0)),      # b_ih + b_hh
                pl.BlockSpec((H, Op), lambda i: (0, 0)),         # W_out^T (lane-padded)
                pl.BlockSpec((1, Op), lambda i: (0, 0)),         # b_out (lane-padded)
            ],
            out_specs=pl.BlockSpec((S * Bp, Op), lambda i: (0, 0)),
            scratch_shapes=[
                pltpu.VMEM((S * Bp, 4 * H), jnp.float32),  # hoisted x-projection
                pltpu.VMEM((S * Bp, H), jnp.float32),      # all hidden states
            ],
        ),
        compiler_params=pltpu.CompilerParams(
            dimension_semantics=("arbitrary",)),           # recurrence, not parallel
    )(x_flat, w_ih_t, w_hh_t, bias2, wout_pad, bout_pad)

    # Undo padding / layout: (S*Bp, Op) -> (B, S, O).
    out = out_flat.reshape(S, Bp, Op)[:, :B, :O]
    return jnp.transpose(out, (1, 0, 2))


def reference_forward(x, w_ih_t, w_hh_t, bias, w_out_t, b_out):
    """Pure-JAX reference matching nn.LSTM(batch_first) + Linear + Tanh."""
    B, S, D = x.shape
    H = w_hh_t.shape[0]

    def step(carry, xt):
        h, c = carry
        gates = xt @ w_ih_t + h @ w_hh_t + bias
        i = jax.nn.sigmoid(gates[:, 0 * H:1 * H])
        f = jax.nn.sigmoid(gates[:, 1 * H:2 * H])
        g = jnp.tanh(gates[:, 2 * H:3 * H])
        o = jax.nn.sigmoid(gates[:, 3 * H:4 * H])
        c = f * c + i * g
        h = o * jnp.tanh(c)
        y = jnp.tanh(h @ w_out_t + b_out)
        return (h, c), y

    init = (jnp.zeros((B, H), jnp.float32), jnp.zeros((B, H), jnp.float32))
    _, ys = jax.lax.scan(step, init, jnp.transpose(x, (1, 0, 2)))
    return jnp.transpose(ys, (1, 0, 2))


if __name__ == "__main__":
    # Small shapes consistent with the module's forward: batch=2, seq=8,
    # in_dim=8, hidden_dim=32, out_dim=8, n_layers=1.
    B, S, D, H, O = 2, 8, 8, 32, 8

    key = jax.random.PRNGKey(0)
    k = jax.random.split(key, 7)
    bound = 1.0 / jnp.sqrt(H)

    # PyTorch stores weight_ih_l0 as (4H, D); we keep the transposed form (D, 4H).
    w_ih_t = jax.random.uniform(k[0], (D, 4 * H), jnp.float32, -bound, bound)
    w_hh_t = jax.random.uniform(k[1], (H, 4 * H), jnp.float32, -bound, bound)
    b_ih = jax.random.uniform(k[2], (4 * H,), jnp.float32, -bound, bound)
    b_hh = jax.random.uniform(k[3], (4 * H,), jnp.float32, -bound, bound)
    bias = b_ih + b_hh
    w_out_t = jax.random.uniform(k[4], (H, O), jnp.float32, -bound, bound)
    b_out = jax.random.uniform(k[5], (O,), jnp.float32, -bound, bound)

    x = jax.random.normal(k[6], (B, S, D), jnp.float32)

    out = lstm_generator_forward(x, w_ih_t, w_hh_t, bias, w_out_t, b_out)
    out = jax.block_until_ready(out)

    ref = reference_forward(x, w_ih_t, w_hh_t, bias, w_out_t, b_out)
    assert out.shape == (B, S, O), out.shape
    assert jnp.allclose(out, ref, atol=1e-5, rtol=1e-5), \
        f"max abs diff {jnp.max(jnp.abs(out - ref))}"

    print("KERNEL_OK")
</pallas_src>

<mosaic_0001>
module attributes {stable_mosaic.version = 11 : i64} {
  func.func @_lstm_gen_kernel(%arg0: i32, %arg1: memref<64x8xf32, #tpu.memory_space<vmem>>, %arg2: memref<8x128xf32, #tpu.memory_space<vmem>>, %arg3: memref<32x128xf32, #tpu.memory_space<vmem>>, %arg4: memref<1x128xf32, #tpu.memory_space<vmem>>, %arg5: memref<32x128xf32, #tpu.memory_space<vmem>>, %arg6: memref<1x128xf32, #tpu.memory_space<vmem>>, %arg7: memref<64x128xf32, #tpu.memory_space<vmem>>, %arg8: memref<64x128xf32, #tpu.memory_space<vmem>>, %arg9: memref<64x32xf32, #tpu.memory_space<vmem>>) attributes {dimension_semantics = [#tpu.dimension_semantics<arbitrary>], iteration_bounds = array<i64: 1>, scalar_prefetch = 0 : i64, scratch_operands = 2 : i64, tpu.core_type = #tpu.core_type<tc>, window_params = [{pipeline_mode = #tpu.pipeline_mode<synchronous>, transform_indices = @transform_0, window_bounds = array<i64: 64, 8>}, {pipeline_mode = #tpu.pipeline_mode<synchronous>, transform_indices = @transform_1, window_bounds = array<i64: 8, 128>}, {pipeline_mode = #tpu.pipeline_mode<synchronous>, transform_indices = @transform_2, window_bounds = array<i64: 32, 128>}, {pipeline_mode = #tpu.pipeline_mode<synchronous>, transform_indices = @transform_3, window_bounds = array<i64: 1, 128>}, {pipeline_mode = #tpu.pipeline_mode<synchronous>, transform_indices = @transform_4, window_bounds = array<i64: 32, 128>}, {pipeline_mode = #tpu.pipeline_mode<synchronous>, transform_indices = @transform_5, window_bounds = array<i64: 1, 128>}, {pipeline_mode = #tpu.pipeline_mode<synchronous>, transform_indices = @transform_6, window_bounds = array<i64: 64, 128>}]} {
    %c0 = arith.constant 0 : index
    %c0_0 = arith.constant 0 : index
    %0 = vector.load %arg1[%c0, %c0_0] : memref<64x8xf32, #tpu.memory_space<vmem>>, vector<64x8xf32>
    %c0_1 = arith.constant 0 : index
    %c0_2 = arith.constant 0 : index
    %1 = vector.load %arg2[%c0_1, %c0_2] : memref<8x128xf32, #tpu.memory_space<vmem>>, vector<8x128xf32>
    %cst = arith.constant dense<0.000000e+00> : vector<64x128xf32>
    %2 = tpu.matmul %0, %1, %cst {dimension_numbers = #tpu.dot_dimension_numbers<[1], [0], [0], [1], [0, 0, 1, 1], [], []>} : vector<64x8xf32>, vector<8x128xf32>, vector<64x128xf32> -> vector<64x128xf32>
    %c0_3 = arith.constant 0 : index
    %c0_4 = arith.constant 0 : index
    %3 = vector.load %arg4[%c0_3, %c0_4] : memref<1x128xf32, #tpu.memory_space<vmem>>, vector<1x128xf32>
    %4 = vector.broadcast %3 : vector<1x128xf32> to vector<64x128xf32>
    %5 = arith.addf %2, %4 : vector<64x128xf32>
    %c0_5 = arith.constant 0 : index
    %c0_6 = arith.constant 0 : index
    %6 = vector.load %arg8[%c0_5, %c0_6] : memref<64x128xf32, #tpu.memory_space<vmem>>, vector<64x128xf32>
    tpu.vector_store %arg8[%c0_5, %c0_6], %5 {strides = array<i32>} : memref<64x128xf32, #tpu.memory_space<vmem>>, vector<64x128xf32>,
    %c0_7 = arith.constant 0 : index
    %c0_8 = arith.constant 0 : index
    %7 = vector.load %arg3[%c0_7, %c0_8] : memref<32x128xf32, #tpu.memory_space<vmem>>, vector<32x128xf32>
    %cst_9 = arith.constant 0.000000e+00 : f32
    %8 = vector.broadcast %cst_9 : f32 to vector<8x32xf32>
    %cst_10 = arith.constant 0.000000e+00 : f32
    %9 = vector.broadcast %cst_10 : f32 to vector<8x32xf32>
    %c0_i32 = arith.constant 0 : i32
    %c8_i32 = arith.constant 8 : i32
    %10 = arith.muli %c0_i32, %c8_i32 : i32
    %11 = tpu.assume_multiple %10, 8 : i32
    %12 = arith.index_cast %11 : i32 to index
    %c0_11 = arith.constant 0 : index
    %13 = vector.load %arg8[%12, %c0_11] : memref<64x128xf32, #tpu.memory_space<vmem>>, vector<8x128xf32>
    %cst_12 = arith.constant dense<0.000000e+00> : vector<8x128xf32>
    %14 = tpu.matmul %8, %7, %cst_12 {dimension_numbers = #tpu.dot_dimension_numbers<[1], [0], [0], [1], [0, 0, 1, 1], [], []>} : vector<8x32xf32>, vector<32x128xf32>, vector<8x128xf32> -> vector<8x128xf32>
    %15 = arith.addf %13, %14 : vector<8x128xf32>
    %16 = vector.extract_strided_slice %15 {offsets = [0, 0], sizes = [8, 32], strides = [1, 1]} : vector<8x128xf32> to vector<8x32xf32>
    %17 = arith.negf %16 : vector<8x32xf32>
    %18 = math.exp %17 : vector<8x32xf32>
    %cst_13 = arith.constant 1.000000e+00 : f32
    %19 = vector.broadcast %cst_13 : f32 to vector<8x32xf32>
    %20 = arith.addf %19, %18 : vector<8x32xf32>
    %21 = arith.divf %19, %20 : vector<8x32xf32>
    %22 = vector.extract_strided_slice %15 {offsets = [0, 32], sizes = [8, 32], strides = [1, 1]} : vector<8x128xf32> to vector<8x32xf32>
    %23 = arith.negf %22 : vector<8x32xf32>
    %24 = math.exp %23 : vector<8x32xf32>
    %cst_14 = arith.constant 1.000000e+00 : f32
    %25 = vector.broadcast %cst_14 : f32 to vector<8x32xf32>
    %26 = arith.addf %25, %24 : vector<8x32xf32>
    %27 = arith.divf %25, %26 : vector<8x32xf32>
    %28 = vector.extract_strided_slice %15 {offsets = [0, 64], sizes = [8, 32], strides = [1, 1]} : vector<8x128xf32> to vector<8x32xf32>
    %29 = math.tanh %28 : vector<8x32xf32>
    %30 = vector.extract_strided_slice %15 {offsets = [0, 96], sizes = [8, 32], strides = [1, 1]} : vector<8x128xf32> to vector<8x32xf32>
    %31 = arith.negf %30 : vector<8x32xf32>
    %32 = math.exp %31 : vector<8x32xf32>
    %cst_15 = arith.constant 1.000000e+00 : f32
    %33 = vector.broadcast %cst_15 : f32 to vector<8x32xf32>
    %34 = arith.addf %33, %32 : vector<8x32xf32>
    %35 = arith.divf %33, %34 : vector<8x32xf32>
    %36 = arith.mulf %27, %9 : vector<8x32xf32>
    %37 = arith.mulf %21, %29 : vector<8x32xf32>
    %38 = arith.addf %36, %37 : vector<8x32xf32>
    %39 = math.tanh %38 : vector<8x32xf32>
    %40 = arith.mulf %35, %39 : vector<8x32xf32>
    %41 = arith.index_cast %11 : i32 to index
    %c0_16 = arith.constant 0 : index
    %42 = vector.load %arg9[%41, %c0_16] : memref<64x32xf32, #tpu.memory_space<vmem>>, vector<8x32xf32>
    tpu.vector_store %arg9[%41, %c0_16], %40 {strides = array<i32>} : memref<64x32xf32, #tpu.memory_space<vmem>>, vector<8x32xf32>,
    %c1_i32 = arith.constant 1 : i32
    %c8_i32_17 = arith.constant 8 : i32
    %43 = arith.muli %c1_i32, %c8_i32_17 : i32
    %44 = tpu.assume_multiple %43, 8 : i32
    %45 = arith.index_cast %44 : i32 to index
    %c0_18 = arith.constant 0 : index
    %46 = vector.load %arg8[%45, %c0_18] : memref<64x128xf32, #tpu.memory_space<vmem>>, vector<8x128xf32>
    %cst_19 = arith.constant dense<0.000000e+00> : vector<8x128xf32>
    %47 = tpu.matmul %40, %7, %cst_19 {dimension_numbers = #tpu.dot_dimension_numbers<[1], [0], [0], [1], [0, 0, 1, 1], [], []>} : vector<8x32xf32>, vector<32x128xf32>, vector<8x128xf32> -> vector<8x128xf32>
    %48 = arith.addf %46, %47 : vector<8x128xf32>
    %49 = vector.extract_strided_slice %48 {offsets = [0, 0], sizes = [8, 32], strides = [1, 1]} : vector<8x128xf32> to vector<8x32xf32>
    %50 = arith.negf %49 : vector<8x32xf32>
    %51 = math.exp %50 : vector<8x32xf32>
    %cst_20 = arith.constant 1.000000e+00 : f32
    %52 = vector.broadcast %cst_20 : f32 to vector<8x32xf32>
    %53 = arith.addf %52, %51 : vector<8x32xf32>
    %54 = arith.divf %52, %53 : vector<8x32xf32>
    %55 = vector.extract_strided_slice %48 {offsets = [0, 32], sizes = [8, 32], strides = [1, 1]} : vector<8x128xf32> to vector<8x32xf32>
    %56 = arith.negf %55 : vector<8x32xf32>
    %57 = math.exp %56 : vector<8x32xf32>
    %cst_21 = arith.constant 1.000000e+00 : f32
    %58 = vector.broadcast %cst_21 : f32 to vector<8x32xf32>
    %59 = arith.addf %58, %57 : vector<8x32xf32>
    %60 = arith.divf %58, %59 : vector<8x32xf32>
    %61 = vector.extract_strided_slice %48 {offsets = [0, 64], sizes = [8, 32], strides = [1, 1]} : vector<8x128xf32> to vector<8x32xf32>
    %62 = math.tanh %61 : vector<8x32xf32>
    %63 = vector.extract_strided_slice %48 {offsets = [0, 96], sizes = [8, 32], strides = [1, 1]} : vector<8x128xf32> to vector<8x32xf32>
    %64 = arith.negf %63 : vector<8x32xf32>
    %65 = math.exp %64 : vector<8x32xf32>
    %cst_22 = arith.constant 1.000000e+00 : f32
    %66 = vector.broadcast %cst_22 : f32 to vector<8x32xf32>
    %67 = arith.addf %66, %65 : vector<8x32xf32>
    %68 = arith.divf %66, %67 : vector<8x32xf32>
    %69 = arith.mulf %60, %38 : vector<8x32xf32>
    %70 = arith.mulf %54, %62 : vector<8x32xf32>
    %71 = arith.addf %69, %70 : vector<8x32xf32>
    %72 = math.tanh %71 : vector<8x32xf32>
    %73 = arith.mulf %68, %72 : vector<8x32xf32>
    %74 = arith.index_cast %44 : i32 to index
    %c0_23 = arith.constant 0 : index
    %75 = vector.load %arg9[%74, %c0_23] : memref<64x32xf32, #tpu.memory_space<vmem>>, vector<8x32xf32>
    tpu.vector_store %arg9[%74, %c0_23], %73 {strides = array<i32>} : memref<64x32xf32, #tpu.memory_space<vmem>>, vector<8x32xf32>,
    %c2_i32 = arith.constant 2 : i32
    %c8_i32_24 = arith.constant 8 : i32
    %76 = arith.muli %c2_i32, %c8_i32_24 : i32
    %77 = tpu.assume_multiple %76, 8 : i32
    %78 = arith.index_cast %77 : i32 to index
    %c0_25 = arith.constant 0 : index
    %79 = vector.load %arg8[%78, %c0_25] : memref<64x128xf32, #tpu.memory_space<vmem>>, vector<8x128xf32>
    %cst_26 = arith.constant dense<0.000000e+00> : vector<8x128xf32>
    %80 = tpu.matmul %73, %7, %cst_26 {dimension_numbers = #tpu.dot_dimension_numbers<[1], [0], [0], [1], [0, 0, 1, 1], [], []>} : vector<8x32xf32>, vector<32x128xf32>, vector<8x128xf32> -> vector<8x128xf32>
    %81 = arith.addf %79, %80 : vector<8x128xf32>
    %82 = vector.extract_strided_slice %81 {offsets = [0, 0], sizes = [8, 32], strides = [1, 1]} : vector<8x128xf32> to vector<8x32xf32>
    %83 = arith.negf %82 : vector<8x32xf32>
    %84 = math.exp %83 : vector<8x32xf32>
    %cst_27 = arith.constant 1.000000e+00 : f32
    %85 = vector.broadcast %cst_27 : f32 to vector<8x32xf32>
    %86 = arith.addf %85, %84 : vector<8x32xf32>
    %87 = arith.divf %85, %86 : vector<8x32xf32>
    %88 = vector.extract_strided_slice %81 {offsets = [0, 32], sizes = [8, 32], strides = [1, 1]} : vector<8x128xf32> to vector<8x32xf32>
    %89 = arith.negf %88 : vector<8x32xf32>
    %90 = math.exp %89 : vector<8x32xf32>
    %cst_28 = arith.constant 1.000000e+00 : f32
    %91 = vector.broadcast %cst_28 : f32 to vector<8x32xf32>
    %92 = arith.addf %91, %90 : vector<8x32xf32>
    %93 = arith.divf %91, %92 : vector<8x32xf32>
    %94 = vector.extract_strided_slice %81 {offsets = [0, 64], sizes = [8, 32], strides = [1, 1]} : vector<8x128xf32> to vector<8x32xf32>
    %95 = math.tanh %94 : vector<8x32xf32>
    %96 = vector.extract_strided_slice %81 {offsets = [0, 96], sizes = [8, 32], strides = [1, 1]} : vector<8x128xf32> to vector<8x32xf32>
    %97 = arith.negf %96 : vector<8x32xf32>
    %98 = math.exp %97 : vector<8x32xf32>
    %cst_29 = arith.constant 1.000000e+00 : f32
    %99 = vector.broadcast %cst_29 : f32 to vector<8x32xf32>
    %100 = arith.addf %99, %98 : vector<8x32xf32>
    %101 = arith.divf %99, %100 : vector<8x32xf32>
    %102 = arith.mulf %93, %71 : vector<8x32xf32>
    %103 = arith.mulf %87, %95 : vector<8x32xf32>
    %104 = arith.addf %102, %103 : vector<8x32xf32>
    %105 = math.tanh %104 : vector<8x32xf32>
    %106 = arith.mulf %101, %105 : vector<8x32xf32>
    %107 = arith.index_cast %77 : i32 to index
    %c0_30 = arith.constant 0 : index
    %108 = vector.load %arg9[%107, %c0_30] : memref<64x32xf32, #tpu.memory_space<vmem>>, vector<8x32xf32>
    tpu.vector_store %arg9[%107, %c0_30], %106 {strides = array<i32>} : memref<64x32xf32, #tpu.memory_space<vmem>>, vector<8x32xf32>,
    %c3_i32 = arith.constant 3 : i32
    %c8_i32_31 = arith.constant 8 : i32
    %109 = arith.muli %c3_i32, %c8_i32_31 : i32
    %110 = tpu.assume_multiple %109, 8 : i32
    %111 = arith.index_cast %110 : i32 to index
    %c0_32 = arith.constant 0 : index
    %112 = vector.load %arg8[%111, %c0_32] : memref<64x128xf32, #tpu.memory_space<vmem>>, vector<8x128xf32>
    %cst_33 = arith.constant dense<0.000000e+00> : vector<8x128xf32>
    %113 = tpu.matmul %106, %7, %cst_33 {dimension_numbers = #tpu.dot_dimension_numbers<[1], [0], [0], [1], [0, 0, 1, 1], [], []>} : vector<8x32xf32>, vector<32x128xf32>, vector<8x128xf32> -> vector<8x128xf32>
    %114 = arith.addf %112, %113 : vector<8x128xf32>
    %115 = vector.extract_strided_slice %114 {offsets = [0, 0], sizes = [8, 32], strides = [1, 1]} : vector<8x128xf32> to vector<8x32xf32>
    %116 = arith.negf %115 : vector<8x32xf32>
    %117 = math.exp %116 : vector<8x32xf32>
    %cst_34 = arith.constant 1.000000e+00 : f32
    %118 = vector.broadcast %cst_34 : f32 to vector<8x32xf32>
    %119 = arith.addf %118, %117 : vector<8x32xf32>
    %120 = arith.divf %118, %119 : vector<8x32xf32>
    %121 = vector.extract_strided_slice %114 {offsets = [0, 32], sizes = [8, 32], strides = [1, 1]} : vector<8x128xf32> to vector<8x32xf32>
    %122 = arith.negf %121 : vector<8x32xf32>
    %123 = math.exp %122 : vector<8x32xf32>
    %cst_35 = arith.constant 1.000000e+00 : f32
    %124 = vector.broadcast %cst_35 : f32 to vector<8x32xf32>
    %125 = arith.addf %124, %123 : vector<8x32xf32>
    %126 = arith.divf %124, %125 : vector<8x32xf32>
    %127 = vector.extract_strided_slice %114 {offsets = [0, 64], sizes = [8, 32], strides = [1, 1]} : vector<8x128xf32> to vector<8x32xf32>
    %128 = math.tanh %127 : vector<8x32xf32>
    %129 = vector.extract_strided_slice %114 {offsets = [0, 96], sizes = [8, 32], strides = [1, 1]} : vector<8x128xf32> to vector<8x32xf32>
    %130 = arith.negf %129 : vector<8x32xf32>
    %131 = math.exp %130 : vector<8x32xf32>
    %cst_36 = arith.constant 1.000000e+00 : f32
    %132 = vector.broadcast %cst_36 : f32 to vector<8x32xf32>
    %133 = arith.addf %132, %131 : vector<8x32xf32>
    %134 = arith.divf %132, %133 : vector<8x32xf32>
    %135 = arith.mulf %126, %104 : vector<8x32xf32>
    %136 = arith.mulf %120, %128 : vector<8x32xf32>
    %137 = arith.addf %135, %136 : vector<8x32xf32>
    %138 = math.tanh %137 : vector<8x32xf32>
    %139 = arith.mulf %134, %138 : vector<8x32xf32>
    %140 = arith.index_cast %110 : i32 to index
    %c0_37 = arith.constant 0 : index
    %141 = vector.load %arg9[%140, %c0_37] : memref<64x32xf32, #tpu.memory_space<vmem>>, vector<8x32xf32>
    tpu.vector_store %arg9[%140, %c0_37], %139 {strides = array<i32>} : memref<64x32xf32, #tpu.memory_space<vmem>>, vector<8x32xf32>,
    %c4_i32 = arith.constant 4 : i32
    %c8_i32_38 = arith.constant 8 : i32
    %142 = arith.muli %c4_i32, %c8_i32_38 : i32
    %143 = tpu.assume_multiple %142, 8 : i32
    %144 = arith.index_cast %143 : i32 to index
    %c0_39 = arith.constant 0 : index
    %145 = vector.load %arg8[%144, %c0_39] : memref<64x128xf32, #tpu.memory_space<vmem>>, vector<8x128xf32>
    %cst_40 = arith.constant dense<0.000000e+00> : vector<8x128xf32>
    %146 = tpu.matmul %139, %7, %cst_40 {dimension_numbers = #tpu.dot_dimension_numbers<[1], [0], [0], [1], [0, 0, 1, 1], [], []>} : vector<8x32xf32>, vector<32x128xf32>, vector<8x128xf32> -> vector<8x128xf32>
    %147 = arith.addf %145, %146 : vector<8x128xf32>
    %148 = vector.extract_strided_slice %147 {offsets = [0, 0], sizes = [8, 32], strides = [1, 1]} : vector<8x128xf32> to vector<8x32xf32>
    %149 = arith.negf %148 : vector<8x32xf32>
    %150 = math.exp %149 : vector<8x32xf32>
    %cst_41 = arith.constant 1.000000e+00 : f32
    %151 = vector.broadcast %cst_41 : f32 to vector<8x32xf32>
    %152 = arith.addf %151, %150 : vector<8x32xf32>
    %153 = arith.divf %151, %152 : vector<8x32xf32>
    %154 = vector.extract_strided_slice %147 {offsets = [0, 32], sizes = [8, 32], strides = [1, 1]} : vector<8x128xf32> to vector<8x32xf32>
    %155 = arith.negf %154 : vector<8x32xf32>
    %156 = math.exp %155 : vector<8x32xf32>
    %cst_42 = arith.constant 1.000000e+00 : f32
    %157 = vector.broadcast %cst_42 : f32 to vector<8x32xf32>
    %158 = arith.addf %157, %156 : vector<8x32xf32>
    %159 = arith.divf %157, %158 : vector<8x32xf32>
    %160 = vector.extract_strided_slice %147 {offsets = [0, 64], sizes = [8, 32], strides = [1, 1]} : vector<8x128xf32> to vector<8x32xf32>
    %161 = math.tanh %160 : vector<8x32xf32>
    %162 = vector.extract_strided_slice %147 {offsets = [0, 96], sizes = [8, 32], strides = [1, 1]} : vector<8x128xf32> to vector<8x32xf32>
    %163 = arith.negf %162 : vector<8x32xf32>
    %164 = math.exp %163 : vector<8x32xf32>
    %cst_43 = arith.constant 1.000000e+00 : f32
    %165 = vector.broadcast %cst_43 : f32 to vector<8x32xf32>
    %166 = arith.addf %165, %164 : vector<8x32xf32>
    %167 = arith.divf %165, %166 : vector<8x32xf32>
    %168 = arith.mulf %159, %137 : vector<8x32xf32>
    %169 = arith.mulf %153, %161 : vector<8x32xf32>
    %170 = arith.addf %168, %169 : vector<8x32xf32>
    %171 = math.tanh %170 : vector<8x32xf32>
    %172 = arith.mulf %167, %171 : vector<8x32xf32>
    %173 = arith.index_cast %143 : i32 to index
    %c0_44 = arith.constant 0 : index
    %174 = vector.load %arg9[%173, %c0_44] : memref<64x32xf32, #tpu.memory_space<vmem>>, vector<8x32xf32>
    tpu.vector_store %arg9[%173, %c0_44], %172 {strides = array<i32>} : memref<64x32xf32, #tpu.memory_space<vmem>>, vector<8x32xf32>,
    %c5_i32 = arith.constant 5 : i32
    %c8_i32_45 = arith.constant 8 : i32
    %175 = arith.muli %c5_i32, %c8_i32_45 : i32
    %176 = tpu.assume_multiple %175, 8 : i32
    %177 = arith.index_cast %176 : i32 to index
    %c0_46 = arith.constant 0 : index
    %178 = vector.load %arg8[%177, %c0_46] : memref<64x128xf32, #tpu.memory_space<vmem>>, vector<8x128xf32>
    %cst_47 = arith.constant dense<0.000000e+00> : vector<8x128xf32>
    %179 = tpu.matmul %172, %7, %cst_47 {dimension_numbers = #tpu.dot_dimension_numbers<[1], [0], [0], [1], [0, 0, 1, 1], [], []>} : vector<8x32xf32>, vector<32x128xf32>, vector<8x128xf32> -> vector<8x128xf32>
    %180 = arith.addf %178, %179 : vector<8x128xf32>
    %181 = vector.extract_strided_slice %180 {offsets = [0, 0], sizes = [8, 32], strides = [1, 1]} : vector<8x128xf32> to vector<8x32xf32>
    %182 = arith.negf %181 : vector<8x32xf32>
    %183 = math.exp %182 : vector<8x32xf32>
    %cst_48 = arith.constant 1.000000e+00 : f32
    %184 = vector.broadcast %cst_48 : f32 to vector<8x32xf32>
    %185 = arith.addf %184, %183 : vector<8x32xf32>
    %186 = arith.divf %184, %185 : vector<8x32xf32>
    %187 = vector.extract_strided_slice %180 {offsets = [0, 32], sizes = [8, 32], strides = [1, 1]} : vector<8x128xf32> to vector<8x32xf32>
    %188 = arith.negf %187 : vector<8x32xf32>
    %189 = math.exp %188 : vector<8x32xf32>
    %cst_49 = arith.constant 1.000000e+00 : f32
    %190 = vector.broadcast %cst_49 : f32 to vector<8x32xf32>
    %191 = arith.addf %190, %189 : vector<8x32xf32>
    %192 = arith.divf %190, %191 : vector<8x32xf32>
    %193 = vector.extract_strided_slice %180 {offsets = [0, 64], sizes = [8, 32], strides = [1, 1]} : vector<8x128xf32> to vector<8x32xf32>
    %194 = math.tanh %193 : vector<8x32xf32>
    %195 = vector.extract_strided_slice %180 {offsets = [0, 96], sizes = [8, 32], strides = [1, 1]} : vector<8x128xf32> to vector<8x32xf32>
    %196 = arith.negf %195 : vector<8x32xf32>
    %197 = math.exp %196 : vector<8x32xf32>
    %cst_50 = arith.constant 1.000000e+00 : f32
    %198 = vector.broadcast %cst_50 : f32 to vector<8x32xf32>
    %199 = arith.addf %198, %197 : vector<8x32xf32>
    %200 = arith.divf %198, %199 : vector<8x32xf32>
    %201 = arith.mulf %192, %170 : vector<8x32xf32>
    %202 = arith.mulf %186, %194 : vector<8x32xf32>
    %203 = arith.addf %201, %202 : vector<8x32xf32>
    %204 = math.tanh %203 : vector<8x32xf32>
    %205 = arith.mulf %200, %204 : vector<8x32xf32>
    %206 = arith.index_cast %176 : i32 to index
    %c0_51 = arith.constant 0 : index
    %207 = vector.load %arg9[%206, %c0_51] : memref<64x32xf32, #tpu.memory_space<vmem>>, vector<8x32xf32>
    tpu.vector_store %arg9[%206, %c0_51], %205 {strides = array<i32>} : memref<64x32xf32, #tpu.memory_space<vmem>>, vector<8x32xf32>,
    %c6_i32 = arith.constant 6 : i32
    %c8_i32_52 = arith.constant 8 : i32
    %208 = arith.muli %c6_i32, %c8_i32_52 : i32
    %209 = tpu.assume_multiple %208, 8 : i32
    %210 = arith.index_cast %209 : i32 to index
    %c0_53 = arith.constant 0 : index
    %211 = vector.load %arg8[%210, %c0_53] : memref<64x128xf32, #tpu.memory_space<vmem>>, vector<8x128xf32>
    %cst_54 = arith.constant dense<0.000000e+00> : vector<8x128xf32>
    %212 = tpu.matmul %205, %7, %cst_54 {dimension_numbers = #tpu.dot_dimension_numbers<[1], [0], [0], [1], [0, 0, 1, 1], [], []>} : vector<8x32xf32>, vector<32x128xf32>, vector<8x128xf32> -> vector<8x128xf32>
    %213 = arith.addf %211, %212 : vector<8x128xf32>
    %214 = vector.extract_strided_slice %213 {offsets = [0, 0], sizes = [8, 32], strides = [1, 1]} : vector<8x128xf32> to vector<8x32xf32>
    %215 = arith.negf %214 : vector<8x32xf32>
    %216 = math.exp %215 : vector<8x32xf32>
    %cst_55 = arith.constant 1.000000e+00 : f32
    %217 = vector.broadcast %cst_55 : f32 to vector<8x32xf32>
    %218 = arith.addf %217, %216 : vector<8x32xf32>
    %219 = arith.divf %217, %218 : vector<8x32xf32>
    %220 = vector.extract_strided_slice %213 {offsets = [0, 32], sizes = [8, 32], strides = [1, 1]} : vector<8x128xf32> to vector<8x32xf32>
    %221 = arith.negf %220 : vector<8x32xf32>
    %222 = math.exp %221 : vector<8x32xf32>
    %cst_56 = arith.constant 1.000000e+00 : f32
    %223 = vector.broadcast %cst_56 : f32 to vector<8x32xf32>
    %224 = arith.addf %223, %222 : vector<8x32xf32>
    %225 = arith.divf %223, %224 : vector<8x32xf32>
    %226 = vector.extract_strided_slice %213 {offsets = [0, 64], sizes = [8, 32], strides = [1, 1]} : vector<8x128xf32> to vector<8x32xf32>
    %227 = math.tanh %226 : vector<8x32xf32>
    %228 = vector.extract_strided_slice %213 {offsets = [0, 96], sizes = [8, 32], strides = [1, 1]} : vector<8x128xf32> to vector<8x32xf32>
    %229 = arith.negf %228 : vector<8x32xf32>
    %230 = math.exp %229 : vector<8x32xf32>
    %cst_57 = arith.constant 1.000000e+00 : f32
    %231 = vector.broadcast %cst_57 : f32 to vector<8x32xf32>
    %232 = arith.addf %231, %230 : vector<8x32xf32>
    %233 = arith.divf %231, %232 : vector<8x32xf32>
    %234 = arith.mulf %225, %203 : vector<8x32xf32>
    %235 = arith.mulf %219, %227 : vector<8x32xf32>
    %236 = arith.addf %234, %235 : vector<8x32xf32>
    %237 = math.tanh %236 : vector<8x32xf32>
    %238 = arith.mulf %233, %237 : vector<8x32xf32>
    %239 = arith.index_cast %209 : i32 to index
    %c0_58 = arith.constant 0 : index
    %240 = vector.load %arg9[%239, %c0_58] : memref<64x32xf32, #tpu.memory_space<vmem>>, vector<8x32xf32>
    tpu.vector_store %arg9[%239, %c0_58], %238 {strides = array<i32>} : memref<64x32xf32, #tpu.memory_space<vmem>>, vector<8x32xf32>,
    %c7_i32 = arith.constant 7 : i32
    %c8_i32_59 = arith.constant 8 : i32
    %241 = arith.muli %c7_i32, %c8_i32_59 : i32
    %242 = tpu.assume_multiple %241, 8 : i32
    %243 = arith.index_cast %242 : i32 to index
    %c0_60 = arith.constant 0 : index
    %244 = vector.load %arg8[%243, %c0_60] : memref<64x128xf32, #tpu.memory_space<vmem>>, vector<8x128xf32>
    %cst_61 = arith.constant dense<0.000000e+00> : vector<8x128xf32>
    %245 = tpu.matmul %238, %7, %cst_61 {dimension_numbers = #tpu.dot_dimension_numbers<[1], [0], [0], [1], [0, 0, 1, 1], [], []>} : vector<8x32xf32>, vector<32x128xf32>, vector<8x128xf32> -> vector<8x128xf32>
    %246 = arith.addf %244, %245 : vector<8x128xf32>
    %247 = vector.extract_strided_slice %246 {offsets = [0, 0], sizes = [8, 32], strides = [1, 1]} : vector<8x128xf32> to vector<8x32xf32>
    %248 = arith.negf %247 : vector<8x32xf32>
    %249 = math.exp %248 : vector<8x32xf32>
    %cst_62 = arith.constant 1.000000e+00 : f32
    %250 = vector.broadcast %cst_62 : f32 to vector<8x32xf32>
    %251 = arith.addf %250, %249 : vector<8x32xf32>
    %252 = arith.divf %250, %251 : vector<8x32xf32>
    %253 = vector.extract_strided_slice %246 {offsets = [0, 32], sizes = [8, 32], strides = [1, 1]} : vector<8x128xf32> to vector<8x32xf32>
    %254 = arith.negf %253 : vector<8x32xf32>
    %255 = math.exp %254 : vector<8x32xf32>
    %cst_63 = arith.constant 1.000000e+00 : f32
    %256 = vector.broadcast %cst_63 : f32 to vector<8x32xf32>
    %257 = arith.addf %256, %255 : vector<8x32xf32>
    %258 = arith.divf %256, %257 : vector<8x32xf32>
    %259 = vector.extract_strided_slice %246 {offsets = [0, 64], sizes = [8, 32], strides = [1, 1]} : vector<8x128xf32> to vector<8x32xf32>
    %260 = math.tanh %259 : vector<8x32xf32>
    %261 = vector.extract_strided_slice %246 {offsets = [0, 96], sizes = [8, 32], strides = [1, 1]} : vector<8x128xf32> to vector<8x32xf32>
    %262 = arith.negf %261 : vector<8x32xf32>
    %263 = math.exp %262 : vector<8x32xf32>
    %cst_64 = arith.constant 1.000000e+00 : f32
    %264 = vector.broadcast %cst_64 : f32 to vector<8x32xf32>
    %265 = arith.addf %264, %263 : vector<8x32xf32>
    %266 = arith.divf %264, %265 : vector<8x32xf32>
    %267 = arith.mulf %258, %236 : vector<8x32xf32>
    %268 = arith.mulf %252, %260 : vector<8x32xf32>
    %269 = arith.addf %267, %268 : vector<8x32xf32>
    %270 = math.tanh %269 : vector<8x32xf32>
    %271 = arith.mulf %266, %270 : vector<8x32xf32>
    %272 = arith.index_cast %242 : i32 to index
    %c0_65 = arith.constant 0 : index
    %273 = vector.load %arg9[%272, %c0_65] : memref<64x32xf32, #tpu.memory_space<vmem>>, vector<8x32xf32>
    tpu.vector_store %arg9[%272, %c0_65], %271 {strides = array<i32>} : memref<64x32xf32, #tpu.memory_space<vmem>>, vector<8x32xf32>,
    %c8_i32_66 = arith.constant 8 : i32
    %c0_67 = arith.constant 0 : index
    %c0_68 = arith.constant 0 : index
    %274 = vector.load %arg9[%c0_67, %c0_68] : memref<64x32xf32, #tpu.memory_space<vmem>>, vector<64x32xf32>
    %c0_69 = arith.constant 0 : index
    %c0_70 = arith.constant 0 : index
    %275 = vector.load %arg5[%c0_69, %c0_70] : memref<32x128xf32, #tpu.memory_space<vmem>>, vector<32x128xf32>
    %cst_71 = arith.constant dense<0.000000e+00> : vector<64x128xf32>
    %276 = tpu.matmul %274, %275, %cst_71 {dimension_numbers = #tpu.dot_dimension_numbers<[1], [0], [0], [1], [0, 0, 1, 1], [], []>} : vector<64x32xf32>, vector<32x128xf32>, vector<64x128xf32> -> vector<64x128xf32>
    %c0_72 = arith.constant 0 : index
    %c0_73 = arith.constant 0 : index
    %277 = vector.load %arg6[%c0_72, %c0_73] : memref<1x128xf32, #tpu.memory_space<vmem>>, vector<1x128xf32>
    %278 = vector.broadcast %277 : vector<1x128xf32> to vector<64x128xf32>
    %279 = arith.addf %276, %278 : vector<64x128xf32>
    %280 = math.tanh %279 : vector<64x128xf32>
    %c0_74 = arith.constant 0 : index
    %c0_75 = arith.constant 0 : index
    %281 = vector.load %arg7[%c0_74, %c0_75] : memref<64x128xf32, #tpu.memory_space<vmem>>, vector<64x128xf32>
    tpu.vector_store %arg7[%c0_74, %c0_75], %280 {strides = array<i32>} : memref<64x128xf32, #tpu.memory_space<vmem>>, vector<64x128xf32>,
    return
  }
  func.func @transform_0(%arg0: i32) -> (i32, i32) {
    %c0_i32 = arith.constant 0 : i32
    %c0_i32_0 = arith.constant 0 : i32
    %c0_i32_1 = arith.constant 0 : i32
    return %c0_i32, %c0_i32_0 : i32, i32
  }
  func.func @transform_1(%arg0: i32) -> (i32, i32) {
    %c0_i32 = arith.constant 0 : i32
    %c0_i32_0 = arith.constant 0 : i32
    %c0_i32_1 = arith.constant 0 : i32
    return %c0_i32, %c0_i32_0 : i32, i32
  }
  func.func @transform_2(%arg0: i32) -> (i32, i32) {
    %c0_i32 = arith.constant 0 : i32
    %c0_i32_0 = arith.constant 0 : i32
    %c0_i32_1 = arith.constant 0 : i32
    return %c0_i32, %c0_i32_0 : i32, i32
  }
  func.func @transform_3(%arg0: i32) -> (i32, i32) {
    %c0_i32 = arith.constant 0 : i32
    %c0_i32_0 = arith.constant 0 : i32
    %c0_i32_1 = arith.constant 0 : i32
    return %c0_i32, %c0_i32_0 : i32, i32
  }
  func.func @transform_4(%arg0: i32) -> (i32, i32) {
    %c0_i32 = arith.constant 0 : i32
    %c0_i32_0 = arith.constant 0 : i32
    %c0_i32_1 = arith.constant 0 : i32
    return %c0_i32, %c0_i32_0 : i32, i32
  }
  func.func @transform_5(%arg0: i32) -> (i32, i32) {
    %c0_i32 = arith.constant 0 : i32
    %c0_i32_0 = arith.constant 0 : i32
    %c0_i32_1 = arith.constant 0 : i32
    return %c0_i32, %c0_i32_0 : i32, i32
  }
  func.func @transform_6(%arg0: i32) -> (i32, i32) {
    %c0_i32 = arith.constant 0 : i32
    %c0_i32_0 = arith.constant 0 : i32
    %c0_i32_1 = arith.constant 0 : i32
    return %c0_i32, %c0_i32_0 : i32, i32
  }
}

</mosaic_0001>

<bundles_post_ra>
// kernel: lstm_generator_forward.1
= control target key start
LH: loop header
LB: loop body
LE: loop exit
PB: predicated region body
PF: predicated region fallthrough
CT: control target
= control target key end

     0   :  { %vm39_vm0 = vcmask 64512   ;;  %v1548_v8 = vmov 0.0|0.0   ;;  %vm1549_vm1 = vmmov 0   ;;  %v1550_v14 = vmov 0.0   ;;  %s1551_s19 = smov 64   ;;  %s1821_s1 = inlined_call_operand.vmem [shape: f32[8,128], index: 1, kind: input, shape index: {}]   ;;  %s1822_s0 = inlined_call_operand.vmem [shape: f32[64,8], index: 0, kind: input, shape index: {}]   ;;  %s1823_s2 = inlined_call_operand.vmem [shape: f32[32,128], index: 2, kind: input, shape index: {}]   ;;  %s1824_s3 = inlined_call_operand.vmem [shape: f32[1,128], index: 3, kind: input, shape index: {}]   ;;  %s1825_s4 = inlined_call_operand.vmem [shape: f32[32,128], index: 4, kind: input, shape index: {}]   ;;  %s1826_s5 = inlined_call_operand.vmem [shape: f32[1,128], index: 5, kind: input, shape index: {}]   ;;  %s1827_s6 = inlined_call_operand.vmem [shape: f32[64,128], index: 6, kind: output, shape index: {}]  }
   0x1   :  { %v31_v0 = vld [vmem:[%s1821_s1] sm:$0xff]  ;;  %v28_v2 = vld [vmem:[%s1822_s0 + $0x28] sm:$0xff]  ;;  %v29_v5 = vld [vmem:[%s1822_s0 + $0x30] sm:$0xff]  ;;  %vm182_vm2 = vcmask 261120  }
   0x2   :  { %v27_v1 = vld [vmem:[%s1822_s0 + $0x20] sm:$0xff]  ;;  %1461 = vmatprep.subr.mxu1 %v31_v0  ;;  %v178_v4 = vld [vmem:[%s1823_s2 + $0x8] sm:$0xff]  ;;  %1283 = vmatprep.subr.mxu0 %v31_v0  ;;  %v179_v10 = vld [vmem:[%s1823_s2 + $0x10] sm:$0xff] }
   0x3   :  { %1291 = vmatprep.mubr.msk.f32.mxu1 %vm39_vm0, %v27_v1  ;;  %v177_v3 = vld [vmem:[%s1823_s2] sm:$0xff]  ;;  %1462 = vmatpush3.msra.mxu1 %v31_v0  ;;  %v24_v9 = vld [vmem:[%s1822_s0 + $0x8] sm:$0xff]  ;;  %v180_v11 = vld [vmem:[%s1823_s2 + $0x18] sm:$0xff] }
   0x4   :  { %v1607_v6 = vpack.c.bf16 %v178_v4, %v177_v3  ;;  %v23_v7 = vld [vmem:[%s1822_s0] sm:$0xff]  ;;  %1292 = vmatmul.mubr.msk.f32.vlgmr.msra.gmra.mrb[0].mxu1 %vm39_vm0, %v28_v2  ;;  %1405 = vmatprep.subr.bf16.mxu1 %v1548_v8  ;;  %v30_v12 = vld [vmem:[%s1822_s0 + $0x38] sm:$0xff]  ;;  %v1628_v13 = vpack.c.bf16 %v180_v11, %v179_v10  ;;  %v25_v54 = vld [vmem:[%s1822_s0 + $0x10] sm:$0xff] }
   0x5   :  { %1294 = vmatprep.mubr.msk.f32.mxu1 %vm39_vm0, %v29_v5  ;;  %1284 = vmatpush3.msra.mxu0 %v31_v0  ;;  %v1657_v18 = vld [vmem:[%s1824_s3] ss:$0 sm:$0xff]  ;;  %s1552_s3 = smov 32   ;;  %v26_v55 = vld [vmem:[%s1822_s0 + $0x18] sm:$0xff] }
   0x6   :  { %1407 = vmatpush3.bf16.msra.mxu1 %v1607_v6  ;;  %1285 = vmatprep.mubr.msk.f32.mxu0 %vm39_vm0, %v23_v7 }
   0x7   :  { %1408 = vmatprep.subr.bf16.mxu1 %v1548_v8  ;;  %1286 = vmatmul.mubr.msk.f32.vlgmr.msra.gmra.mrb[0].mxu0 %vm39_vm0, %v24_v9 }
   0x8   :  { %1295 = vmatmul.mubr.msk.f32.gmra.mrb[2].mxu1 %vm39_vm0, %v30_v12  ;;  %1417 = vmatprep.subr.bf16.mxu0 %v1548_v8 }
   0x9   :  { %1305 = vmatprep.mubr.msk.f32.mxu1 %vm1549_vm1, %v1550_v14  ;;  %1419 = vmatpush3.bf16.msra.mxu0 %v1607_v6 }
   0xa   :  { %1410 = vmatpush3.bf16.msra.mxu1 %v1628_v13  ;;  %1420 = vmatprep.subr.bf16.mxu0 %v1548_v8 }
   0xb   :  { %1411 = vmatprep.subr.bf16.mxu1 %v1548_v8  ;;  %1288 = vmatprep.mubr.msk.f32.mxu0 %vm39_vm0, %v25_v54 }
   0xc   :  { %1289 = vmatmul.mubr.msk.f32.gmra.mrb[2].mxu0 %vm39_vm0, %v26_v55 }
   0xd   :  { %1306 = vmatmul.mubr.f32.vlgmr.msra.gmra.mrb[4].mxu1 %v1550_v14  ;;  %1422 = vmatpush3.bf16.msra.mxu0 %v1628_v13 }
   0xe   :  { %1413 = vmatpush3.bf16.msra.mxu1 %v1607_v6  ;;  %1316 = vmatprep.mubr.msk.f32.mxu1 %vm1549_vm1, %v1550_v14 }
   0xf   :  { %1414 = vmatprep.subr.bf16.mxu1 %v1548_v8  ;;  %1429 = vmatprep.subr.bf16.mxu0 %v1548_v8 }
  0x10   :  { %1327 = vmatprep.mubr.msk.f32.mxu0 %vm1549_vm1, %v1550_v14 }
  0x12   :  { %1416 = vmatpush3.bf16.msra.mxu1 %v1628_v13 }
  0x13   :  { %1423 = vmatprep.subr.bf16.mxu1 %v1548_v8 }
  0xd7   :  { %v1650_v15 = vpop.f32.mrb[0].mxu1 }
  0xd8   :  { %v1652_v16 = vpop.f32.mrb[1].mxu1 }
  0xda   :  { %v1287_v17 = vpop.f32.mrb[0].mxu0 }
  0xdb   :  { %v1659_v19 = vpop.f32.mrb[2].mxu1  ;;  %v130_v20 = vpop.f32.mrb[1].mxu0  ;;  %v136_v40 = vadd.f32 %v1287_v17, %v1657_v18 }
  0xdc   :  { %v1661_v21 = vpop.f32.mrb[3].mxu1  ;;  %v131_v22 = vadd.f32 %v1657_v18, %v130_v20 }
  0xdf   :  { %v1290_v59 = vpop.f32.mrb[2].mxu0 }
  0xe0   :  { %v252_v23 = vpop.f32.mrb[4].mxu1  ;;  %v140_v60 = vpop.f32.mrb[3].mxu0 }
  0xe1   :  { %v256_v24 = vadd.f32 %v252_v23, %v131_v22  ;;  %v1307_v25 = vpop.f32.mrb[5].mxu1  ;;  %v141_v62 = vadd.f32 %v1657_v18, %v140_v60  ;;  %v156_v60 = vadd.f32 %v1650_v15, %v1657_v18 }
  0xe2   :  { %v146_v25 = vadd.f32 %v1290_v59, %v1657_v18 }
  0xe3   :  { %1468 = vtanh.f32 %v256_v24  ;;  %v1198_v27 = vmul.f32 -1.442695, %v256_v24 }
  0xe5   :  { %1470 = vpow2.f32 %v1198_v27 }
  0xed   :  { %v1469_v26 = vpop.eup %1468 }
  0xee   :  { %266 = vrot.lane.b32.xlu0 %v1469_v26, %s1551_s19 }
  0xef   :  { %v1471_v28 = vpop.eup %1470 }
  0xf0   :  { %v260_v29 = vadd.f32 1.0, %v1471_v28 }
  0xf2   :  { %1472 = vrcp.f32 %v260_v29 }
  0xfc   :  { %v1473_v30 = vpop.eup %1472 }
  0xfd   :  { %v264_v33 = vmul.f32 0.0, %v1473_v30 }
 0x160   :  { %v267_v31 = vpop.permute.xlu0 %266 }
 0x161   :  { %v269_v32 = vmul.f32 %v1473_v30, %v267_v31 }
 0x163   :  { %271 = vrot.lane.b32.xlu0 %v269_v32, %s1552_s3 }
 0x1d5   :  { %v272_v34 = vpop.permute.xlu0 %271 }
 0x1d6   :  { %v274_v35 = vadd.f32 %v272_v34, %v264_v33 }
 0x1d8   :  { %1474 = vtanh.f32 %v274_v35 }
 0x1e2   :  { %v1475_v36 = vpop.eup %1474 }
 0x1e3   :  { %277 = vrot.lane.b32.xlu1 %v1475_v36, %s1551_s19 }
 0x255   :  { %v278_v37 = vpop.permute.xlu1 %277 }
 0x256   :  { %v280_v38 = vmul.f32 %v1473_v30, %v278_v37 }
 0x258   :  { %282 = vrot.lane.b32.xlu1 %v280_v38, %s1552_s3 }
 0x2ca   :  { %v283_v39 = vpop.permute.xlu1 %282 }
 0x2cb   :  { %285 = vst.msk [vmem:[#allocation3] sm:$0xff] %vm182_vm2, %v283_v39  ;;  %1317 = vmatmul.mubr.msk.f32.vlgmr.msra.gmra.mrb[6].mxu1 %vm182_vm2, %v283_v39 }
 0x2cc   :  { %1425 = vmatpush3.bf16.msra.mxu1 %v1607_v6  ;;  %1338 = vmatprep.mubr.msk.f32.mxu1 %vm1549_vm1, %v1550_v14 }
 0x2cd   :  { %1426 = vmatprep.subr.bf16.mxu1 %v1548_v8 }
 0x2d0   :  { %1428 = vmatpush3.bf16.msra.mxu1 %v1628_v13 }
 0x2d1   :  { %1435 = vmatprep.subr.bf16.mxu1 %v1548_v8 }
 0x39e   :  { %v356_v41 = vpop.f32.mrb[6].mxu1 }
 0x39f   :  { %v360_v42 = vadd.f32 %v356_v41, %v136_v40  ;;  %v1318_v43 = vpop.f32.mrb[7].mxu1 }
 0x3a0   :  { %v151_v43 = vadd.f32 %v1657_v18, %v1652_v16 }
 0x3a1   :  { %1476 = vtanh.f32 %v360_v42  ;;  %v1200_v45 = vmul.f32 -1.442695, %v360_v42 }
 0x3a3   :  { %1478 = vpow2.f32 %v1200_v45 }
 0x3ab   :  { %v1477_v44 = vpop.eup %1476 }
 0x3ac   :  { %370 = vrot.lane.b32.xlu0 %v1477_v44, %s1551_s19 }
 0x3ad   :  { %v1479_v46 = vpop.eup %1478 }
 0x3ae   :  { %v364_v47 = vadd.f32 1.0, %v1479_v46 }
 0x3b0   :  { %1480 = vrcp.f32 %v364_v47 }
 0x3ba   :  { %v1481_v48 = vpop.eup %1480 }
 0x3bb   :  { %v368_v51 = vmul.f32 %v1481_v48, %v274_v35 }
 0x41e   :  { %v371_v49 = vpop.permute.xlu0 %370 }
 0x41f   :  { %v373_v50 = vmul.f32 %v1481_v48, %v371_v49 }
 0x421   :  { %375 = vrot.lane.b32.xlu1 %v373_v50, %s1552_s3 }
 0x493   :  { %v376_v52 = vpop.permute.xlu1 %375 }
 0x494   :  { %v378_v53 = vadd.f32 %v376_v52, %v368_v51 }
 0x496   :  { %1482 = vtanh.f32 %v378_v53 }
 0x4a0   :  { %v1483_v56 = vpop.eup %1482 }
 0x4a1   :  { %381 = vrot.lane.b32.xlu0 %v1483_v56, %s1551_s19 }
 0x513   :  { %v382_v57 = vpop.permute.xlu0 %381 }
 0x514   :  { %v384_v58 = vmul.f32 %v1481_v48, %v382_v57 }
 0x516   :  { %386 = vrot.lane.b32.xlu1 %v384_v58, %s1552_s3 }
 0x588   :  { %v387_v61 = vpop.permute.xlu1 %386 }
 0x589   :  { %390 = vst.msk [vmem:[#allocation3 + $0x8] sm:$0xff] %vm182_vm2, %v387_v61  ;;  %1328 = vmatmul.mubr.msk.f32.vlgmr.msra.gmra.mrb[4].mxu0 %vm182_vm2, %v387_v61 }
 0x58a   :  { %1431 = vmatpush3.bf16.msra.mxu0 %v1607_v6  ;;  %1349 = vmatprep.mubr.msk.f32.mxu0 %vm1549_vm1, %v1550_v14 }
 0x58b   :  { %1432 = vmatprep.subr.bf16.mxu0 %v1548_v8 }
 0x58e   :  { %1434 = vmatpush3.bf16.msra.mxu0 %v1628_v13 }
 0x58f   :  { %1441 = vmatprep.subr.bf16.mxu0 %v1548_v8 }
 0x65c   :  { %v461_v63 = vpop.f32.mrb[4].mxu0 }
 0x65d   :  { %v465_v0 = vadd.f32 %v461_v63, %v141_v62  ;;  %v1329_v1 = vpop.f32.mrb[5].mxu0 }
 0x65f   :  { %1484 = vtanh.f32 %v465_v0  ;;  %v1202_v3 = vmul.f32 -1.442695, %v465_v0 }
 0x661   :  { %1486 = vpow2.f32 %v1202_v3 }
 0x669   :  { %v1485_v2 = vpop.eup %1484 }
 0x66a   :  { %475 = vrot.lane.b32.xlu0 %v1485_v2, %s1551_s19 }
 0x66b   :  { %v1487_v4 = vpop.eup %1486 }
 0x66c   :  { %v469_v5 = vadd.f32 1.0, %v1487_v4 }
 0x66e   :  { %1488 = vrcp.f32 %v469_v5  ;;  %v1029_v5 = vld [vmem:[%s1825_s4] sm:$0xff] }
 0x678   :  { %v1489_v7 = vpop.eup %1488 }
 0x679   :  { %v473_v11 = vmul.f32 %v1489_v7, %v378_v53 }
 0x6dc   :  { %v476_v9 = vpop.permute.xlu0 %475 }
 0x6dd   :  { %v478_v10 = vmul.f32 %v1489_v7, %v476_v9 }
 0x6df   :  { %480 = vrot.lane.b32.xlu1 %v478_v10, %s1552_s3 }
 0x751   :  { %v481_v12 = vpop.permute.xlu1 %480 }
 0x752   :  { %v483_v17 = vadd.f32 %v481_v12, %v473_v11 }
 0x754   :  { %1490 = vtanh.f32 %v483_v17 }
 0x75e   :  { %v1491_v20 = vpop.eup %1490 }
 0x75f   :  { %486 = vrot.lane.b32.xlu0 %v1491_v20, %s1551_s19  ;;  %v1032_v20 = vld [vmem:[%s1825_s4 + $0x18] sm:$0xff] }
 0x7d1   :  { %v487_v22 = vpop.permute.xlu0 %486 }
 0x7d2   :  { %v489_v23 = vmul.f32 %v1489_v7, %v487_v22  ;;  %v1030_v7 = vld [vmem:[%s1825_s4 + $0x8] sm:$0xff] }
 0x7d3   :  { %v1453_v9 = vpack.c.bf16 %v1030_v7, %v1029_v5 }
 0x7d4   :  { %491 = vrot.lane.b32.xlu1 %v489_v23, %s1552_s3 }
 0x846   :  { %v492_v24 = vpop.permute.xlu1 %491 }
 0x847   :  { %495 = vst.msk [vmem:[#allocation3 + $0x10] sm:$0xff] %vm182_vm2, %v492_v24  ;;  %1339 = vmatmul.mubr.msk.f32.vlgmr.msra.gmra.mrb[8].mxu1 %vm182_vm2, %v492_v24  ;;  %v1021_v24 = vld [vmem:[#allocation3] sm:$0xff] }
 0x848   :  { %1437 = vmatpush3.bf16.msra.mxu1 %v1607_v6  ;;  %1360 = vmatprep.mubr.msk.f32.mxu1 %vm1549_vm1, %v1550_v14 }
 0x849   :  { %1438 = vmatprep.subr.bf16.mxu1 %v1548_v8 }
 0x84c   :  { %1440 = vmatpush3.bf16.msra.mxu1 %v1628_v13 }
 0x84d   :  { %1447 = vmatprep.subr.bf16.mxu1 %v1548_v8 }
 0x91a   :  { %v566_v26 = vpop.f32.mrb[8].mxu1 }
 0x91b   :  { %v570_v27 = vadd.f32 %v566_v26, %v146_v25  ;;  %v1340_v28 = vpop.f32.mrb[9].mxu1  ;;  %v1022_v25 = vld [vmem:[#allocation3 + $0x8] sm:$0xff]  ;;  %v1023_v26 = vld [vmem:[#allocation3 + $0x10] sm:$0xff] }
 0x91d   :  { %1492 = vtanh.f32 %v570_v27  ;;  %v1204_v30 = vmul.f32 -1.442695, %v570_v27 }
 0x91f   :  { %1494 = vpow2.f32 %v1204_v30  ;;  %v161_v30 = vadd.f32 %v1657_v18, %v1661_v21 }
 0x927   :  { %v1493_v29 = vpop.eup %1492 }
 0x928   :  { %580 = vrot.lane.b32.xlu0 %v1493_v29, %s1551_s19 }
 0x929   :  { %v1495_v31 = vpop.eup %1494 }
 0x92a   :  { %v574_v32 = vadd.f32 1.0, %v1495_v31 }
 0x92c   :  { %1496 = vrcp.f32 %v574_v32 }
 0x936   :  { %v1497_v33 = vpop.eup %1496 }
 0x937   :  { %v578_v36 = vmul.f32 %v1497_v33, %v483_v17  ;;  %v1031_v17 = vld [vmem:[%s1825_s4 + $0x10] sm:$0xff] }
 0x938   :  { %v1457_v22 = vpack.c.bf16 %v1032_v20, %v1031_v17 }
 0x99a   :  { %v581_v34 = vpop.permute.xlu0 %580 }
 0x99b   :  { %v583_v35 = vmul.f32 %v1497_v33, %v581_v34  ;;  %v1771_v34 = vld [vmem:[%s1826_s5] ss:$0 sm:$0xff] }
 0x99d   :  { %585 = vrot.lane.b32.xlu1 %v583_v35, %s1552_s3 }
 0xa0f   :  { %v586_v37 = vpop.permute.xlu1 %585 }
 0xa10   :  { %v588_v38 = vadd.f32 %v586_v37, %v578_v36 }
 0xa12   :  { %1498 = vtanh.f32 %v588_v38 }
 0xa1c   :  { %v1499_v39 = vpop.eup %1498 }
 0xa1d   :  { %591 = vrot.lane.b32.xlu0 %v1499_v39, %s1551_s19 }
 0xa8f   :  { %v592_v40 = vpop.permute.xlu0 %591 }
 0xa90   :  { %v594_v41 = vmul.f32 %v1497_v33, %v592_v40 }
 0xa92   :  { %596 = vrot.lane.b32.xlu1 %v594_v41, %s1552_s3 }
 0xb04   :  { %v597_v42 = vpop.permute.xlu1 %596 }
 0xb05   :  { %600 = vst.msk [vmem:[#allocation3 + $0x18] sm:$0xff] %vm182_vm2, %v597_v42  ;;  %1350 = vmatmul.mubr.msk.f32.vlgmr.msra.gmra.mrb[6].mxu0 %vm182_vm2, %v597_v42 }
 0xb06   :  { %1443 = vmatpush3.bf16.msra.mxu0 %v1607_v6  ;;  %1371 = vmatprep.mubr.msk.f32.mxu0 %vm1549_vm1, %v1550_v14 }
 0xb07   :  { %1444 = vmatprep.subr.bf16.mxu0 %v1548_v8 }
 0xb0a   :  { %1446 = vmatpush3.bf16.msra.mxu0 %v1628_v13 }
 0xb0b   :  { %1454 = vmatprep.subr.bf16.mxu0 %v1453_v9 }
 0xb0c   :  { %v1024_v27 = vld [vmem:[#allocation3 + $0x18] sm:$0xff] }
 0xbd8   :  { %v671_v44 = vpop.f32.mrb[6].mxu0 }
 0xbd9   :  { %v675_v45 = vadd.f32 %v671_v44, %v151_v43  ;;  %v1351_v46 = vpop.f32.mrb[7].mxu0 }
 0xbdb   :  { %1500 = vtanh.f32 %v675_v45  ;;  %v1206_v48 = vmul.f32 -1.442695, %v675_v45 }
 0xbdd   :  { %1502 = vpow2.f32 %v1206_v48 }
 0xbe5   :  { %v1501_v47 = vpop.eup %1500 }
 0xbe6   :  { %685 = vrot.lane.b32.xlu0 %v1501_v47, %s1551_s19 }
 0xbe7   :  { %v1503_v49 = vpop.eup %1502 }
 0xbe8   :  { %v679_v50 = vadd.f32 1.0, %v1503_v49 }
 0xbea   :  { %1504 = vrcp.f32 %v679_v50 }
 0xbf4   :  { %v1505_v51 = vpop.eup %1504 }
 0xbf5   :  { %v683_v54 = vmul.f32 %v1505_v51, %v588_v38 }
 0xc58   :  { %v686_v52 = vpop.permute.xlu0 %685 }
 0xc59   :  { %v688_v53 = vmul.f32 %v1505_v51, %v686_v52 }
 0xc5b   :  { %690 = vrot.lane.b32.xlu1 %v688_v53, %s1552_s3 }
 0xccd   :  { %v691_v55 = vpop.permute.xlu1 %690 }
 0xcce   :  { %v693_v16 = vadd.f32 %v691_v55, %v683_v54 }
 0xcd0   :  { %1506 = vtanh.f32 %v693_v16 }
 0xcda   :  { %v1507_v56 = vpop.eup %1506 }
 0xcdb   :  { %696 = vrot.lane.b32.xlu0 %v1507_v56, %s1551_s19 }
 0xd4d   :  { %v697_v57 = vpop.permute.xlu0 %696 }
 0xd4e   :  { %v699_v58 = vmul.f32 %v1505_v51, %v697_v57 }
 0xd50   :  { %701 = vrot.lane.b32.xlu1 %v699_v58, %s1552_s3 }
 0xdc2   :  { %v702_v59 = vpop.permute.xlu1 %701 }
 0xdc3   :  { %705 = vst.msk [vmem:[#allocation3 + $0x20] sm:$0xff] %vm182_vm2, %v702_v59  ;;  %1361 = vmatmul.mubr.msk.f32.vlgmr.msra.gmra.mrb[10].mxu1 %vm182_vm2, %v702_v59 }
 0xdc4   :  { %1449 = vmatpush3.bf16.msra.mxu1 %v1607_v6  ;;  %1382 = vmatprep.mubr.msk.f32.mxu1 %vm1549_vm1, %v1550_v14 }
 0xdc5   :  { %1450 = vmatprep.subr.bf16.mxu1 %v1548_v8 }
 0xdc8   :  { %1452 = vmatpush3.bf16.msra.mxu1 %v1628_v13 }
 0xdca   :  { %v1025_v28 = vld [vmem:[#allocation3 + $0x20] sm:$0xff] }
 0xe96   :  { %v776_v61 = vpop.f32.mrb[10].mxu1 }
 0xe97   :  { %v780_v62 = vadd.f32 %v776_v61, %v156_v60  ;;  %v1362_v63 = vpop.f32.mrb[11].mxu1 }
 0xe99   :  { %1508 = vtanh.f32 %v780_v62  ;;  %v1208_v1 = vmul.f32 -1.442695, %v780_v62 }
 0xe9b   :  { %1510 = vpow2.f32 %v1208_v1 }
 0xea3   :  { %v1509_v0 = vpop.eup %1508 }
 0xea4   :  { %790 = vrot.lane.b32.xlu0 %v1509_v0, %s1551_s19 }
 0xea5   :  { %v1511_v6 = vpop.eup %1510 }
 0xea6   :  { %v784_v2 = vadd.f32 1.0, %v1511_v6  ;;  %v166_v6 = vadd.f32 %v1659_v19, %v1657_v18 }
 0xea8   :  { %1512 = vrcp.f32 %v784_v2 }
 0xeb2   :  { %v1513_v14 = vpop.eup %1512 }
 0xeb3   :  { %v788_v13 = vmul.f32 %v1513_v14, %v693_v16 }
 0xf16   :  { %v791_v3 = vpop.permute.xlu0 %790 }
 0xf17   :  { %v793_v8 = vmul.f32 %v1513_v14, %v791_v3 }
 0xf19   :  { %795 = vrot.lane.b32.xlu1 %v793_v8, %s1552_s3 }
 0xf8b   :  { %v796_v4 = vpop.permute.xlu1 %795 }
 0xf8c   :  { %v1741_v15 = vadd.f32 %v796_v4, %v788_v13 }
 0xf8e   :  { %1514 = vtanh.f32 %v1741_v15 }
 0xf98   :  { %v1515_v10 = vpop.eup %1514 }
 0xf99   :  { %801 = vrot.lane.b32.xlu0 %v1515_v10, %s1551_s19 }
0x100b   :  { %v802_v11 = vpop.permute.xlu0 %801 }
0x100c   :  { %v804_v12 = vmul.f32 %v1513_v14, %v802_v11 }
0x100e   :  { %806 = vrot.lane.b32.xlu1 %v804_v12, %s1552_s3 }
0x1080   :  { %v807_v23 = vpop.permute.xlu1 %806 }
0x1081   :  { %810 = vst.msk [vmem:[#allocation3 + $0x28] sm:$0xff] %vm182_vm2, %v807_v23  ;;  %1372 = vmatmul.mubr.msk.f32.vlgmr.msra.gmra.mrb[8].mxu0 %vm182_vm2, %v807_v23 }
0x1082   :  { %1456 = vmatpush3.bf16.msra.mxu0 %v1453_v9  ;;  %1393 = vmatprep.mubr.msk.f32.mxu0 %vm182_vm2, %v1021_v24 }
0x1083   :  { %1458 = vmatprep.subr.bf16.mxu0 %v1457_v22 }
0x1086   :  { %1460 = vmatpush3.bf16.msra.mxu0 %v1457_v22 }
0x1088   :  { %v1026_v29 = vld [vmem:[#allocation3 + $0x28] sm:$0xff] }
0x1089   :  { %1394 = vmatmul.mubr.msk.f32.vlgmr.msra.gmra.mrb[10].mxu0 %vm182_vm2, %v1022_v25 }
0x108a   :  { %1396 = vmatprep.mubr.msk.f32.mxu0 %vm182_vm2, %v1023_v26 }
0x108d   :  { %1397 = vmatmul.mubr.msk.f32.gmra.mrb[12].mxu0 %vm182_vm2, %v1024_v27 }
0x108e   :  { %1399 = vmatprep.mubr.msk.f32.mxu0 %vm182_vm2, %v1025_v28 }
0x1091   :  { %1400 = vmatmul.mubr.msk.f32.gmra.mrb[14].mxu0 %vm182_vm2, %v1026_v29 }
0x1154   :  { %v881_v31 = vpop.f32.mrb[8].mxu0 }
0x1155   :  { %v885_v32 = vadd.f32 %v881_v31, %v161_v30  ;;  %v1373_v33 = vpop.f32.mrb[9].mxu0 }
0x1157   :  { %1516 = vtanh.f32 %v885_v32  ;;  %v1210_v53 = vmul.f32 -1.442695, %v885_v32 }
0x115c   :  { %v1395_v35 = vpop.f32.mrb[10].mxu0 }
0x115d   :  { %v1136_v36 = vadd.f32 %v1395_v35, %v1771_v34  ;;  %v1130_v37 = vpop.f32.mrb[11].mxu0 }
0x115e   :  { %v1131_v38 = vadd.f32 %v1771_v34, %v1130_v37 }
0x115f   :  { %1518 = vtanh.f32 %v1136_v36 }
0x1160   :  { %1520 = vtanh.f32 %v1131_v38  ;;  %v1398_v39 = vpop.f32.mrb[12].mxu0 }
0x1161   :  { %v1517_v40 = vpop.eup %1516  ;;  %v1146_v21 = vadd.f32 %v1398_v39, %v1771_v34  ;;  %v1140_v41 = vpop.f32.mrb[13].mxu0 }
0x1162   :  { %v1141_v42 = vadd.f32 %v1771_v34, %v1140_v41  ;;  %895 = vrot.lane.b32.xlu0 %v1517_v40, %s1551_s19 }
0x1163   :  { %1522 = vtanh.f32 %v1146_v21 }
0x1164   :  { %1524 = vtanh.f32 %v1141_v42  ;;  %v1401_v43 = vpop.f32.mrb[14].mxu0 }
0x1165   :  { %v1156_v44 = vadd.f32 %v1401_v43, %v1771_v34  ;;  %v1150_v45 = vpop.f32.mrb[15].mxu0 }
0x1166   :  { %v1151_v46 = vadd.f32 %v1771_v34, %v1150_v45 }
0x1167   :  { %1526 = vtanh.f32 %v1156_v44 }
0x1168   :  { %1528 = vtanh.f32 %v1151_v46 }
0x1169   :  { %v1519_v47 = vpop.eup %1518  ;;  %1530 = vpow2.f32 %v1210_v53 }
0x116a   :  { %v1521_v48 = vpop.eup %1520  ;;  %1178 = vst [vmem:[%s1827_s6 + $0x8] sm:$0xff] %v1519_v47 }
0x116b   :  { %1177 = vst [vmem:[%s1827_s6] sm:$0xff] %v1521_v48 }
0x116d   :  { %v1523_v49 = vpop.eup %1522 }
0x116e   :  { %v1525_v50 = vpop.eup %1524  ;;  %1180 = vst [vmem:[%s1827_s6 + $0x18] sm:$0xff] %v1523_v49 }
0x116f   :  { %1179 = vst [vmem:[%s1827_s6 + $0x10] sm:$0xff] %v1525_v50 }
0x1171   :  { %v1527_v51 = vpop.eup %1526 }
0x1172   :  { %v1529_v52 = vpop.eup %1528  ;;  %1182 = vst [vmem:[%s1827_s6 + $0x28] sm:$0xff] %v1527_v51 }
0x1173   :  { %1181 = vst [vmem:[%s1827_s6 + $0x20] sm:$0xff] %v1529_v52  ;;  %v1531_v54 = vpop.eup %1530 }
0x1174   :  { %v889_v55 = vadd.f32 1.0, %v1531_v54 }
0x1176   :  { %1532 = vrcp.f32 %v889_v55 }
0x1180   :  { %v1533_v16 = vpop.eup %1532 }
0x1181   :  { %v893_v58 = vmul.f32 %v1533_v16, %v1741_v15 }
0x11d4   :  { %v896_v56 = vpop.permute.xlu0 %895 }
0x11d5   :  { %v898_v57 = vmul.f32 %v1533_v16, %v896_v56 }
0x11d7   :  { %900 = vrot.lane.b32.xlu1 %v898_v57, %s1552_s3 }
0x1249   :  { %v901_v59 = vpop.permute.xlu1 %900 }
0x124a   :  { %v903_v60 = vadd.f32 %v901_v59, %v893_v58 }
0x124c   :  { %1534 = vtanh.f32 %v903_v60 }
0x1256   :  { %v1535_v61 = vpop.eup %1534 }
0x1257   :  { %906 = vrot.lane.b32.xlu0 %v1535_v61, %s1551_s19 }
0x12c9   :  { %v907_v62 = vpop.permute.xlu0 %906 }
0x12ca   :  { %v909_v63 = vmul.f32 %v1533_v16, %v907_v62 }
0x12cc   :  { %911 = vrot.lane.b32.xlu1 %v909_v63, %s1552_s3 }
0x133e   :  { %v912_v0 = vpop.permute.xlu1 %911 }
0x133f   :  { %915 = vst.msk [vmem:[#allocation3 + $0x30] sm:$0xff] %vm182_vm2, %v912_v0  ;;  %1383 = vmatmul.mubr.msk.f32.vlgmr.msra.gmra.mrb[12].mxu1 %vm182_vm2, %v912_v0 }
0x1346   :  { %v1027_v1 = vld [vmem:[#allocation3 + $0x30] sm:$0xff] }
0x1347   :  { %1402 = vmatprep.mubr.msk.f32.mxu0 %vm182_vm2, %v1027_v1 }
0x1412   :  { %v986_v2 = vpop.f32.mrb[12].mxu1 }
0x1413   :  { %v990_v14 = vadd.f32 %v986_v2, %v166_v6  ;;  %v1384_v3 = vpop.f32.mrb[13].mxu1 }
0x1415   :  { %1536 = vtanh.f32 %v990_v14  ;;  %v1212_v13 = vmul.f32 -1.442695, %v990_v14 }
0x1417   :  { %1538 = vpow2.f32 %v1212_v13 }
0x141f   :  { %v1537_v8 = vpop.eup %1536 }
0x1420   :  { %1000 = vrot.lane.b32.xlu0 %v1537_v8, %s1551_s19 }
0x1421   :  { %v1539_v4 = vpop.eup %1538 }
0x1422   :  { %v994_v15 = vadd.f32 1.0, %v1539_v4 }
0x1424   :  { %1540 = vrcp.f32 %v994_v15 }
0x142e   :  { %v1541_v5 = vpop.eup %1540 }
0x142f   :  { %v998_v10 = vmul.f32 %v1541_v5, %v903_v60 }
0x1492   :  { %v1001_v7 = vpop.permute.xlu0 %1000 }
0x1493   :  { %v1003_v9 = vmul.f32 %v1541_v5, %v1001_v7 }
0x1495   :  { %1005 = vrot.lane.b32.xlu1 %v1003_v9, %s1552_s3 }
0x1507   :  { %v1006_v11 = vpop.permute.xlu1 %1005 }
0x1508   :  { %v1008_v18 = vadd.f32 %v1006_v11, %v998_v10 }
0x150a   :  { %1542 = vtanh.f32 %v1008_v18 }
0x1514   :  { %v1543_v19 = vpop.eup %1542 }
0x1515   :  { %1011 = vrot.lane.b32.xlu0 %v1543_v19, %s1551_s19 }
0x1587   :  { %v1012_v12 = vpop.permute.xlu0 %1011 }
0x1588   :  { %v1014_v17 = vmul.f32 %v1541_v5, %v1012_v12 }
0x158a   :  { %1016 = vrot.lane.b32.xlu1 %v1014_v17, %s1552_s3 }
0x15fc   :  { %v1017_v20 = vpop.permute.xlu1 %1016 }
0x15fd   :  { %1020 = vst.msk [vmem:[#allocation3 + $0x38] sm:$0xff] %vm182_vm2, %v1017_v20 }
0x1604   :  { %v1028_v22 = vld [vmem:[#allocation3 + $0x38] sm:$0xff] }
0x1605   :  { %1403 = vmatmul.mubr.msk.f32.gmra.mrb[16].mxu0 %vm182_vm2, %v1028_v22 }
0x16d8   :  { %v1404_v23 = vpop.f32.mrb[16].mxu0 }
0x16d9   :  { %v1166_v24 = vadd.f32 %v1404_v23, %v1771_v34  ;;  %v1160_v25 = vpop.f32.mrb[17].mxu0 }
0x16da   :  { %v1161_v26 = vadd.f32 %v1771_v34, %v1160_v25 }
0x16db   :  { %1544 = vtanh.f32 %v1166_v24 }
0x16dc   :  { %1546 = vtanh.f32 %v1161_v26 }
0x16e5   :  { %v1545_v27 = vpop.eup %1544 }
0x16e6   :  { %v1547_v28 = vpop.eup %1546  ;;  %1184 = vst [vmem:[%s1827_s6 + $0x38] sm:$0xff] %v1545_v27 }
0x16e7   :  { %1183 = vst [vmem:[%s1827_s6 + $0x30] sm:$0xff] %v1547_v28 }

</bundles_post_ra>
